<compile_context>
chip_gen: v6e
topology: v6e:2x2x1
jax: 0.10.0
libtpu: 0.0.40
codegen_flags: <defaults>
</compile_context>

<pallas_src>
import functools

import jax
import jax.numpy as jnp
from jax.experimental import pallas as pl
from jax.experimental.pallas import tpu as pltpu


# ---------------------------------------------------------------------------
# Tiling helpers
# ---------------------------------------------------------------------------
def _pick_tile_rows(b):
    """Row tile TB for the (B, N*Fin) @ (N*Fin, N*Fout) fused matmul.

    - small batches: one block equal to the full array (legal block shape).
    - otherwise: the candidate in {2048, 1024, 512, 256} (multiples of 256 to fill
      the 2x256x256 MXU on v6e/v7x) that gives >= 2 grid steps (both v7x TCs get
      work) with the least zero-padding.  Never returns B itself for large B, so a
      pathological batch size can never blow VMEM.
    """
    if b <= 512:
        return b
    best_tb, best_pad = 256, None
    for tb in (2048, 1024, 512, 256):
        nbt = -(-b // tb)
        if nbt < 2:
            continue
        pad = nbt * tb - b
        if best_pad is None or pad < best_pad:
            best_tb, best_pad = tb, pad
    return best_tb


def _const_spec(shape):
    """BlockSpec for a grid-invariant operand: single-buffer it (double-buffering a
    block that never changes only wastes VMEM and a DMA buffer)."""
    try:
        return pl.BlockSpec(shape, lambda i: (0, 0), pipeline_mode=pl.Buffered(1))
    except (AttributeError, TypeError):  # older jax without pipeline_mode
        return pl.BlockSpec(shape, lambda i: (0, 0))


# ---------------------------------------------------------------------------
# Kernels
# ---------------------------------------------------------------------------
def _fused_matmul_kernel(x_ref, a_ref, b_ref, o_ref):
    """out = x @ A + bias   (one MXU matmul, f32 accumulation, lane-dense store).

    Used both for the non-BN forward and for the BN apply pass (where the BN scale
    is pre-folded into A and scale*bias+shift into the bias), so the normalized
    output is written to HBM exactly once."""
    y = jnp.dot(x_ref[...], a_ref[...], preferred_element_type=jnp.float32)
    o_ref[...] = (y + b_ref[...]).astype(o_ref.dtype)


def _bn_stats_kernel(x_ref, a_ref, b_ref, psum_ref, pm2_ref, *,
                     rows_total, tile_rows):
    """Pass 1: recomputable activation -> per-tile centered BN partials only.

    Emits, per (tile, wide-column): sum over valid rows and the sum of squared
    deviations from the tile/column mean (M2).  The big activation is NOT written
    to HBM.  Padded rows (zero-padded ragged batch) are masked out of the stats."""
    y = jnp.dot(x_ref[...], a_ref[...],
                preferred_element_type=jnp.float32) + b_ref[...]

    if rows_total % tile_rows == 0:          # static: no padded rows anywhere
        s = jnp.sum(y, axis=0, keepdims=True)
        m = s * (1.0 / tile_rows)
        d = y - m
        m2 = jnp.sum(d * d, axis=0, keepdims=True)
    else:                                    # ragged batch: mask the padded tail
        i = pl.program_id(0)
        row = jax.lax.broadcasted_iota(jnp.int32, y.shape, 0)
        valid = (i * tile_rows + row) < rows_total
        cnt = jnp.minimum(tile_rows, rows_total - i * tile_rows).astype(jnp.float32)
        ym = jnp.where(valid, y, 0.0)
        s = jnp.sum(ym, axis=0, keepdims=True)
        m = s / cnt
        d = jnp.where(valid, y - m, 0.0)
        m2 = jnp.sum(d * d, axis=0, keepdims=True)

    psum_ref[0] = s
    pm2_ref[0] = m2


# ---------------------------------------------------------------------------
# pallas_call wrappers
# ---------------------------------------------------------------------------
def _fused_matmul(x_pad, a, bias, out_dtype, tb, nbt, nfi, nfo):
    bp = x_pad.shape[0]
    cost = pl.CostEstimate(
        flops=2 * bp * nfi * nfo,
        transcendentals=0,
        bytes_accessed=(bp * nfi * x_pad.dtype.itemsize
                        + nfi * nfo * a.dtype.itemsize
                        + nfo * 4
                        + bp * nfo * jnp.dtype(out_dtype).itemsize),
    )
    return pl.pallas_call(
        _fused_matmul_kernel,
        out_shape=jax.ShapeDtypeStruct((bp, nfo), out_dtype),
        grid_spec=pltpu.PrefetchScalarGridSpec(
            num_scalar_prefetch=0,
            grid=(nbt,),
            in_specs=[
                pl.BlockSpec((tb, nfi), lambda i: (i, 0)),
                _const_spec((nfi, nfo)),     # resident fused weight
                _const_spec((1, nfo)),       # resident fused bias
            ],
            out_specs=pl.BlockSpec((tb, nfo), lambda i: (i, 0)),
        ),
        compiler_params=pltpu.CompilerParams(
            dimension_semantics=("parallel",)),
        cost_estimate=cost,
    )(x_pad, a, bias)


def _bn_partial_stats(x_pad, a, bias, rows_total, tb, nbt, nfi, nfo):
    bp = x_pad.shape[0]
    cost = pl.CostEstimate(
        flops=2 * bp * nfi * nfo + 6 * bp * nfo,
        transcendentals=0,
        bytes_accessed=(bp * nfi * x_pad.dtype.itemsize
                        + nfi * nfo * a.dtype.itemsize
                        + nfo * 4
                        + 2 * nbt * nfo * 4),
    )
    return pl.pallas_call(
        functools.partial(_bn_stats_kernel, rows_total=rows_total, tile_rows=tb),
        out_shape=(
            jax.ShapeDtypeStruct((nbt, 1, nfo), jnp.float32),
            jax.ShapeDtypeStruct((nbt, 1, nfo), jnp.float32),
        ),
        grid_spec=pltpu.PrefetchScalarGridSpec(
            num_scalar_prefetch=0,
            grid=(nbt,),
            in_specs=[
                pl.BlockSpec((tb, nfi), lambda i: (i, 0)),
                _const_spec((nfi, nfo)),
                _const_spec((1, nfo)),
            ],
            out_specs=(
                pl.BlockSpec((1, 1, nfo), lambda i: (i, 0, 0)),
                pl.BlockSpec((1, 1, nfo), lambda i: (i, 0, 0)),
            ),
        ),
        compiler_params=pltpu.CompilerParams(
            dimension_semantics=("parallel",)),
        cost_estimate=cost,
    )(x_pad, a, bias)


# ---------------------------------------------------------------------------
# DeepSetLayer forward
# ---------------------------------------------------------------------------
def deepset_layer(x, wg, bg, wl, bl, bn_w=None, bn_b=None,
                  normalisation='batchnorm', pool='mean'):
    """Matches DeepSetLayer.forward (training-mode BatchNorm1d, eps=1e-5).
    The 'mean' and 'max' pool branches are identical in the reference module."""
    del pool
    B, N, Fin = x.shape
    Fout = wg.shape[1]
    nfi, nfo = N * Fin, N * Fout
    f32 = jnp.float32
    cdt = x.dtype                    # storage dtype for big operands (bf16-friendly)

    # ---- fold gamma + Lambda + set-mean subtraction into one fused weight ----
    W = (wg + wl).astype(f32)                                        # (Fin, Fout)
    eye_n = jnp.eye(N, dtype=f32)
    A = (eye_n[:, None, :, None] * W[None, :, None, :]
         - (wl.astype(f32) / N)[None, :, None, :]).reshape(nfi, nfo)
    bias = jnp.tile((bg + bl).astype(f32).reshape(1, Fout), (1, N))  # (1, nfo)

    # ---- row tiling (ragged batches are zero-padded; stats are masked) ----
    TB = _pick_tile_rows(B)
    nbt = pl.cdiv(B, TB)
    Bp = nbt * TB
    x_wide = x.reshape(B, nfi).astype(cdt)
    if Bp != B:
        x_wide = jnp.pad(x_wide, ((0, Bp - B), (0, 0)))

    if normalisation != 'batchnorm':
        y = _fused_matmul(x_wide, A.astype(cdt), bias, cdt, TB, nbt, nfi, nfo)
        return y[:B].reshape(B, N, Fout)

    # ---- pass 1: BN partial statistics only (activation never hits HBM) ----
    psum, pm2 = _bn_partial_stats(x_wide, A.astype(cdt), bias, B, TB, nbt, nfi, nfo)

    # ---- tiny O(Fout) BN finalize in plain JAX (Chan parallel-variance merge) ----
    cnts = jnp.minimum(TB, B - jnp.arange(nbt) * TB).astype(f32)     # rows per tile
    total = jnp.asarray(B * N, f32)
    s = psum.reshape(nbt, N, Fout)
    m2 = pm2.reshape(nbt, N, Fout)
    mu = s.sum(axis=(0, 1)) / total                                  # (Fout,)
    mean_g = s / cnts[:, None, None]
    M2 = (m2 + cnts[:, None, None] * (mean_g - mu) ** 2).sum(axis=(0, 1))
    var = M2 / total                                                 # biased (BN training)
    gamma = jnp.ones((Fout,), f32) if bn_w is None else bn_w.astype(f32).reshape(Fout)
    beta = jnp.zeros((Fout,), f32) if bn_b is None else bn_b.astype(f32).reshape(Fout)
    scale = gamma * jax.lax.rsqrt(var + 1e-5)
    shift = beta - mu * scale
    scale_w = jnp.tile(scale, N).reshape(1, nfo)
    shift_w = jnp.tile(shift, N).reshape(1, nfo)

    # ---- pass 2: recompute activation with the BN scale folded into A and the
    #      BN shift folded into the bias -> one matmul, one HBM write ----
    A_bn = (A * scale_w).astype(cdt)
    bias_bn = bias * scale_w + shift_w
    out = _fused_matmul(x_wide, A_bn, bias_bn, cdt, TB, nbt, nfi, nfo)
    return out[:B].reshape(B, N, Fout)


# ---------------------------------------------------------------------------
# Pure-JAX reference (matches the PyTorch module in training mode)
# ---------------------------------------------------------------------------
def _reference(x, wg, bg, wl, bl, bn_w, bn_b, normalisation='batchnorm'):
    m = jnp.mean(x, axis=1, keepdims=True)
    out = x @ wg + bg + (x - m) @ wl + bl
    if normalisation != 'batchnorm':
        return out
    mu = jnp.mean(out, axis=(0, 1), keepdims=True)
    var = jnp.mean((out - mu) ** 2, axis=(0, 1), keepdims=True)
    return (out - mu) * jax.lax.rsqrt(var + 1e-5) * bn_w + bn_b


if __name__ == "__main__":
    N, Fin, Fout = 8, 32, 32
    key = jax.random.PRNGKey(0)
    kx, kwg, kbg, kwl, kbl, kx2 = jax.random.split(key, 6)

    # nn.Linear-style parameters, stored pre-transposed as (F_in, F_out).
    lim = 1.0 / (Fin ** 0.5)
    wg = jax.random.uniform(kwg, (Fin, Fout), jnp.float32, -lim, lim)
    bg = jax.random.uniform(kbg, (1, Fout), jnp.float32, -lim, lim)
    wl = jax.random.uniform(kwl, (Fin, Fout), jnp.float32, -lim, lim)
    bl = jax.random.uniform(kbl, (1, Fout), jnp.float32, -lim, lim)
    bn_w = jnp.ones((Fout,), jnp.float32)    # BatchNorm1d default weight
    bn_b = jnp.zeros((Fout,), jnp.float32)   # BatchNorm1d default bias

    # --- small batch (single tile): batchnorm on and off ---
    B = 2
    x = jax.random.normal(kx, (B, N, Fin), jnp.float32)
    out = jax.block_until_ready(
        deepset_layer(x, wg, bg, wl, bl, bn_w, bn_b, 'batchnorm'))
    ref = _reference(x, wg, bg, wl, bl, bn_w, bn_b, 'batchnorm')
    assert out.shape == (B, N, Fout)
    assert jnp.allclose(out, ref, atol=1e-4, rtol=1e-4), "BN mismatch (small B)"

    out_nb = jax.block_until_ready(
        deepset_layer(x, wg, bg, wl, bl, None, None, 'none'))
    ref_nb = _reference(x, wg, bg, wl, bl, bn_w, bn_b, 'none')
    assert jnp.allclose(out_nb, ref_nb, atol=1e-4, rtol=1e-4), "no-BN mismatch"

    # --- ragged larger batch: exercises multi-tile grid, padding and masked stats ---
    B2 = 600
    x2 = jax.random.normal(kx2, (B2, N, Fin), jnp.float32)
    out2 = jax.block_until_ready(
        deepset_layer(x2, wg, bg, wl, bl, bn_w, bn_b, 'batchnorm'))
    ref2 = _reference(x2, wg, bg, wl, bl, bn_w, bn_b, 'batchnorm')
    assert out2.shape == (B2, N, Fout)
    assert jnp.allclose(out2, ref2, atol=1e-4, rtol=1e-4), "BN mismatch (tiled B)"

    print("KERNEL_OK")
</pallas_src>

<mosaic_0001>
module attributes {stable_mosaic.version = 11 : i64} {
  func.func @_bn_stats_kernel(%arg0: i32, %arg1: memref<2x256xf32, #tpu.memory_space<vmem>>, %arg2: memref<256x256xf32, #tpu.memory_space<vmem>>, %arg3: memref<1x256xf32, #tpu.memory_space<vmem>>, %arg4: memref<1x1x256xf32, #tpu.memory_space<vmem>>, %arg5: memref<1x1x256xf32, #tpu.memory_space<vmem>>) attributes {dimension_semantics = [#tpu.dimension_semantics<parallel>], iteration_bounds = array<i64: 1>, scalar_prefetch = 0 : i64, scratch_operands = 0 : i64, tpu.core_type = #tpu.core_type<tc>, window_params = [{transform_indices = @transform_0, window_bounds = array<i64: 2, 256>}, {pipeline_mode = #tpu.pipeline_mode<synchronous>, transform_indices = @transform_1, window_bounds = array<i64: 256, 256>}, {pipeline_mode = #tpu.pipeline_mode<synchronous>, transform_indices = @transform_2, window_bounds = array<i64: 1, 256>}, {transform_indices = @transform_3, window_bounds = array<i64: 1, 1, 256>}, {transform_indices = @transform_4, window_bounds = array<i64: 1, 1, 256>}]} {
    %c0 = arith.constant 0 : index
    %c0_0 = arith.constant 0 : index
    %0 = vector.load %arg1[%c0, %c0_0] : memref<2x256xf32, #tpu.memory_space<vmem>>, vector<2x256xf32>
    %c0_1 = arith.constant 0 : index
    %c0_2 = arith.constant 0 : index
    %1 = vector.load %arg2[%c0_1, %c0_2] : memref<256x256xf32, #tpu.memory_space<vmem>>, vector<256x256xf32>
    %cst = arith.constant dense<0.000000e+00> : vector<2x256xf32>
    %2 = tpu.matmul %0, %1, %cst {dimension_numbers = #tpu.dot_dimension_numbers<[1], [0], [0], [1], [0, 0, 1, 1], [], []>} : vector<2x256xf32>, vector<256x256xf32>, vector<2x256xf32> -> vector<2x256xf32>
    %c0_3 = arith.constant 0 : index
    %c0_4 = arith.constant 0 : index
    %3 = vector.load %arg3[%c0_3, %c0_4] : memref<1x256xf32, #tpu.memory_space<vmem>>, vector<1x256xf32>
    %4 = vector.broadcast %3 : vector<1x256xf32> to vector<2x256xf32>
    %5 = arith.addf %2, %4 : vector<2x256xf32>
    %cst_5 = arith.constant dense<0.000000e+00> : vector<256xf32>
    %6 = vector.multi_reduction <add>, %5, %cst_5 [0] : vector<2x256xf32> to vector<256xf32>
    %7 = vector.shape_cast %6 : vector<256xf32> to vector<1x256xf32>
    %cst_6 = arith.constant 5.000000e-01 : f32
    %8 = vector.broadcast %cst_6 : f32 to vector<1x256xf32>
    %9 = arith.mulf %7, %8 : vector<1x256xf32>
    %10 = vector.broadcast %9 : vector<1x256xf32> to vector<2x256xf32>
    %11 = arith.subf %5, %10 : vector<2x256xf32>
    %12 = arith.mulf %11, %11 : vector<2x256xf32>
    %cst_7 = arith.constant dense<0.000000e+00> : vector<256xf32>
    %13 = vector.multi_reduction <add>, %12, %cst_7 [0] : vector<2x256xf32> to vector<256xf32>
    %14 = vector.shape_cast %13 : vector<256xf32> to vector<1x256xf32>
    %c0_8 = arith.constant 0 : index
    %c0_9 = arith.constant 0 : index
    %c0_10 = arith.constant 0 : index
    %15 = vector.load %arg4[%c0_8, %c0_9, %c0_10] : memref<1x1x256xf32, #tpu.memory_space<vmem>>, vector<1x1x256xf32>
    %16 = vector.shape_cast %15 : vector<1x1x256xf32> to vector<1x256xf32>
    %17 = vector.shape_cast %7 : vector<1x256xf32> to vector<1x1x256xf32>
    tpu.vector_store %arg4[%c0_8, %c0_9, %c0_10], %17 {strides = array<i32>} : memref<1x1x256xf32, #tpu.memory_space<vmem>>, vector<1x1x256xf32>,
    %c0_11 = arith.constant 0 : index
    %c0_12 = arith.constant 0 : index
    %c0_13 = arith.constant 0 : index
    %18 = vector.load %arg5[%c0_11, %c0_12, %c0_13] : memref<1x1x256xf32, #tpu.memory_space<vmem>>, vector<1x1x256xf32>
    %19 = vector.shape_cast %18 : vector<1x1x256xf32> to vector<1x256xf32>
    %20 = vector.shape_cast %14 : vector<1x256xf32> to vector<1x1x256xf32>
    tpu.vector_store %arg5[%c0_11, %c0_12, %c0_13], %20 {strides = array<i32>} : memref<1x1x256xf32, #tpu.memory_space<vmem>>, vector<1x1x256xf32>,
    return
  }
  func.func @transform_0(%arg0: i32) -> (i32, i32) {
    %c0_i32 = arith.constant 0 : i32
    %c0_i32_0 = arith.constant 0 : i32
    return %arg0, %c0_i32 : i32, i32
  }
  func.func @transform_1(%arg0: i32) -> (i32, i32) {
    %c0_i32 = arith.constant 0 : i32
    %c0_i32_0 = arith.constant 0 : i32
    %c0_i32_1 = arith.constant 0 : i32
    return %c0_i32, %c0_i32_0 : i32, i32
  }
  func.func @transform_2(%arg0: i32) -> (i32, i32) {
    %c0_i32 = arith.constant 0 : i32
    %c0_i32_0 = arith.constant 0 : i32
    %c0_i32_1 = arith.constant 0 : i32
    return %c0_i32, %c0_i32_0 : i32, i32
  }
  func.func @transform_3(%arg0: i32) -> (i32, i32, i32) {
    %c0_i32 = arith.constant 0 : i32
    %c0_i32_0 = arith.constant 0 : i32
    %c0_i32_1 = arith.constant 0 : i32
    return %arg0, %c0_i32, %c0_i32_0 : i32, i32, i32
  }
  func.func @transform_4(%arg0: i32) -> (i32, i32, i32) {
    %c0_i32 = arith.constant 0 : i32
    %c0_i32_0 = arith.constant 0 : i32
    %c0_i32_1 = arith.constant 0 : i32
    return %arg0, %c0_i32, %c0_i32_0 : i32, i32, i32
  }
}

</mosaic_0001>

<bundles_post_ra>
// kernel: tpu_custom_call.1
= control target key start
LH: loop header
LB: loop body
LE: loop exit
PB: predicated region body
PF: predicated region fallthrough
CT: control target
= control target key end

     0   :  { %10 = vsyncpa [#allocation3], 0  ;;  %s470_s0 = inlined_call_operand.hbm [shape: f32[2,256], index: 0, kind: input, shape index: {}]   ;;  %s471_s1 = inlined_call_operand.hbm [shape: f32[256,256], index: 1, kind: input, shape index: {}]   ;;  %s472_s2 = inlined_call_operand.vmem [shape: f32[1,256], index: 2, kind: input, shape index: {}]   ;;  %s473_s3 = inlined_call_operand.hbm [shape: f32[1,1,256], index: 3, kind: output, shape index: {0}]   ;;  %s474_s4 = inlined_call_operand.hbm [shape: f32[1,1,256], index: 4, kind: output, shape index: {1}]  }
   0x1   :  { %11 = vsyncpa [#allocation6], 0 }
   0x2   :  { %12 = vsyncpa [#allocation4], 0 }
   0x3   :  { %13 = vsyncpa [#allocation9], 0  ;;  %s406_s15 = smov [#allocation2]   ;;  %s407_s17 = smov [#allocation5]  }
   0x4   :  { %s20_s16 = sshll.u32 %s406_s15, 4  ;;  %s29_s18 = sshll.u32 %s407_s17, 4  ;;  %s21_s16 = int_to_ptr.vmem [resolvable:$true] %s20_s16  ;;  %s30_s18 = int_to_ptr.vmem [resolvable:$true] %s29_s18 }
   0x5   :  { %s326_s19 = scalar_lea.vmem %s21_s16, 64  ;;  %p331_p1 = scmp.lt.s32.totalorder %s21_s16, %s21_s16 }
   0x6   :  { %p327_p0 = scmp.ne.s32.totalorder %s21_s16, %s326_s19  ;;  %p332_p2 = scmp.lt.s32.totalorder %s326_s19, %s326_s19 }
   0x8   :  { %p333_p3 = por %p332_p2, %p331_p1 }
   0xa   :  { %p334_p4 = pnand %p333_p3, %p327_p0 }
   0xc   :  { %337 = shalt.err (!%p334_p4)
}
   0xd   :  { %23 = dma.hbm_to_vmem [thread:$0]  %s470_s0, 64, %s21_s16, [#allocation3]  }
   0xe   :  { %s346_s22 = scalar_lea.vmem %s30_s18, 8192  ;;  %p351_p6 = scmp.lt.s32.totalorder %s30_s18, %s30_s18 }
   0xf   :  { %p347_p5 = scmp.ne.s32.totalorder %s30_s18, %s346_s22  ;;  %p352_p7 = scmp.lt.s32.totalorder %s346_s22, %s346_s22 }
  0x11   :  { %p353_p8 = por %p352_p7, %p351_p6 }
  0x13   :  { %p354_p9 = pnand %p353_p8, %p347_p5 }
  0x15   :  { %357 = shalt.err (!%p354_p9)
}
  0x16   :  { %s408_s23 = smov 256   ;;  %s409_s24 = smov 16  }
  0x17   :  { %35 = dma.hbm_to_vmem [thread:$0]  %s471_s1, 8192, %s30_s18, [#allocation6], %s408_s23, %s408_s23, %s409_s24  }
  0x18   :  { %398 = dma.done.wait [#allocation3], 64  }
  0x19   :  { %399 = vsyncadd [#allocation3], 4294967232 }
  0x1a   :  { %400 = dma.done.wait [#allocation6], 8192  }
  0x1b   :  { %401 = vsyncadd [#allocation6], 4294959104  ;;  %v76_v0 = vld [vmem:[#allocation5 + $0xf8] sm:$0xff]  ;;  %v75_v1 = vld [vmem:[#allocation5 + $0xf0] sm:$0xff]  ;;  %vm203_vm0 = vcmask 1041408  }
  0x1c   :  { %v74_v2 = vld [vmem:[#allocation5 + $0xe8] sm:$0xff]  ;;  %132 = vmatprep.subr.mxu0 %v76_v0  ;;  %v73_v3 = vld [vmem:[#allocation5 + $0xe0] sm:$0xff]  ;;  %v72_v4 = vld [vmem:[#allocation5 + $0xd8] sm:$0xff] }
  0x1d   :  { %133 = vmatpush1.msra.mxu0 %v75_v1  ;;  %v71_v5 = vld [vmem:[#allocation5 + $0xd0] sm:$0xff]  ;;  %v70_v6 = vld [vmem:[#allocation5 + $0xc8] sm:$0xff]  ;;  %v69_v7 = vld [vmem:[#allocation5 + $0xc0] sm:$0xff] }
  0x1e   :  { %134 = vmatprep.subr.mxu0 %v74_v2  ;;  %v68_v8 = vld [vmem:[#allocation5 + $0xb8] sm:$0xff]  ;;  %v67_v9 = vld [vmem:[#allocation5 + $0xb0] sm:$0xff]  ;;  %v66_v10 = vld [vmem:[#allocation5 + $0xa8] sm:$0xff]  ;;  %v111_v2 = vlaneseq }
  0x1f   :  { %135 = vmatpush1.msra.mxu0 %v73_v3  ;;  %v65_v11 = vld [vmem:[#allocation5 + $0xa0] sm:$0xff]  ;;  %v64_v12 = vld [vmem:[#allocation5 + $0x98] sm:$0xff]  ;;  %v63_v13 = vld [vmem:[#allocation5 + $0x90] sm:$0xff] }
  0x20   :  { %136 = vmatprep.subr.mxu0 %v72_v4  ;;  %v62_v14 = vld [vmem:[#allocation5 + $0x88] sm:$0xff]  ;;  %v61_v15 = vld [vmem:[#allocation5 + $0x80] sm:$0xff]  ;;  %v60_v16 = vld [vmem:[#allocation5 + $0x78] sm:$0xff]  ;;  %v112_v3 = vshrl.u32 %v111_v2, 7  ;;  %vm454_vm1 = vcmp.lt.s32.totalorder %v111_v2, 256 }
  0x21   :  { %137 = vmatpush1.msra.mxu0 %v71_v5  ;;  %v59_v17 = vld [vmem:[#allocation5 + $0x70] sm:$0xff]  ;;  %v58_v18 = vld [vmem:[#allocation5 + $0x68] sm:$0xff]  ;;  %v57_v19 = vld [vmem:[#allocation5 + $0x60] sm:$0xff] }
  0x22   :  { %138 = vmatprep.subr.mxu0 %v70_v6  ;;  %v56_v20 = vld [vmem:[#allocation5 + $0x58] sm:$0xff]  ;;  %v55_v21 = vld [vmem:[#allocation5 + $0x50] sm:$0xff]  ;;  %v54_v22 = vld [vmem:[#allocation5 + $0x48] sm:$0xff]  ;;  %v113_v4 = vsub.s32 0, %v112_v3  ;;  %v117_v6 = vsub.s32 1, %v112_v3 }
  0x23   :  { %139 = vmatpush1.msra.mxu0 %v69_v7  ;;  %v53_v23 = vld [vmem:[#allocation5 + $0x40] sm:$0xff]  ;;  %v444_v24 = vld.sshfl [vmem:[#allocation2] sm:$0x33 pattern:$0x76325410]  ;;  %v51_v27 = vld [vmem:[#allocation5 + $0x30] sm:$0xff] }
  0x24   :  { %140 = vmatprep.subr.mxu0 %v68_v8  ;;  %v52_v25 = vld [vmem:[#allocation5 + $0x38] sm:$0xff]  ;;  %v129_v26 = vcombine.high %v444_v24, %v444_v24  ;;  %v50_v28 = vld [vmem:[#allocation5 + $0x28] sm:$0xff]  ;;  %v49_v29 = vld [vmem:[#allocation5 + $0x20] sm:$0xff] }
  0x25   :  { %141 = vmatpush1.msra.mxu0 %v67_v9  ;;  %v48_v30 = vld [vmem:[#allocation5 + $0x18] sm:$0xff]  ;;  %v47_v31 = vld [vmem:[#allocation5 + $0x10] sm:$0xff]  ;;  %v46_v32 = vld [vmem:[#allocation5 + $0x8] sm:$0xff] }
  0x26   :  { %142 = vmatprep.subr.mxu0 %v66_v10  ;;  %196 = vmatprep.mubr.f32.mxu0 %v129_v26  ;;  %v45_v33 = vld [vmem:[#allocation5] sm:$0xff]  ;;  %v108_v34 = vld [vmem:[#allocation5 + $0x1f8] sm:$0xff]  ;;  %v107_v35 = vld [vmem:[#allocation5 + $0x1f0] sm:$0xff] }
  0x27   :  { %143 = vmatpush1.msra.mxu0 %v65_v11  ;;  %v106_v36 = vld [vmem:[#allocation5 + $0x1e8] sm:$0xff]  ;;  %v105_v37 = vld [vmem:[#allocation5 + $0x1e0] sm:$0xff]  ;;  %v104_v38 = vld [vmem:[#allocation5 + $0x1d8] sm:$0xff] }
  0x28   :  { %144 = vmatprep.subr.mxu0 %v64_v12  ;;  %v103_v39 = vld [vmem:[#allocation5 + $0x1d0] sm:$0xff]  ;;  %v102_v40 = vld [vmem:[#allocation5 + $0x1c8] sm:$0xff]  ;;  %v101_v41 = vld [vmem:[#allocation5 + $0x1c0] sm:$0xff] }
  0x29   :  { %145 = vmatpush1.msra.mxu0 %v63_v13  ;;  %v100_v42 = vld [vmem:[#allocation5 + $0x1b8] sm:$0xff]  ;;  %v99_v43 = vld [vmem:[#allocation5 + $0x1b0] sm:$0xff]  ;;  %v98_v44 = vld [vmem:[#allocation5 + $0x1a8] sm:$0xff] }
  0x2a   :  { %146 = vmatprep.subr.mxu0 %v62_v14  ;;  %v97_v45 = vld [vmem:[#allocation5 + $0x1a0] sm:$0xff]  ;;  %v96_v46 = vld [vmem:[#allocation5 + $0x198] sm:$0xff]  ;;  %v95_v47 = vld [vmem:[#allocation5 + $0x190] sm:$0xff] }
  0x2b   :  { %147 = vmatpush1.msra.mxu0 %v61_v15  ;;  %v94_v48 = vld [vmem:[#allocation5 + $0x188] sm:$0xff]  ;;  %v93_v49 = vld [vmem:[#allocation5 + $0x180] sm:$0xff]  ;;  %v92_v50 = vld [vmem:[#allocation5 + $0x178] sm:$0xff] }
  0x2c   :  { %148 = vmatprep.subr.mxu0 %v60_v16  ;;  %v91_v51 = vld [vmem:[#allocation5 + $0x170] sm:$0xff]  ;;  %v90_v52 = vld [vmem:[#allocation5 + $0x168] sm:$0xff]  ;;  %v89_v53 = vld [vmem:[#allocation5 + $0x160] sm:$0xff] }
  0x2d   :  { %149 = vmatpush1.msra.mxu0 %v59_v17  ;;  %v88_v54 = vld [vmem:[#allocation5 + $0x158] sm:$0xff]  ;;  %v87_v55 = vld [vmem:[#allocation5 + $0x150] sm:$0xff]  ;;  %v86_v56 = vld [vmem:[#allocation5 + $0x148] sm:$0xff] }
  0x2e   :  { %150 = vmatprep.subr.mxu0 %v58_v18  ;;  %v85_v57 = vld [vmem:[#allocation5 + $0x140] sm:$0xff]  ;;  %v84_v58 = vld [vmem:[#allocation5 + $0x138] sm:$0xff]  ;;  %v83_v59 = vld [vmem:[#allocation5 + $0x130] sm:$0xff] }
  0x2f   :  { %151 = vmatpush1.msra.mxu0 %v57_v19  ;;  %v82_v60 = vld [vmem:[#allocation5 + $0x128] sm:$0xff]  ;;  %v81_v61 = vld [vmem:[#allocation5 + $0x120] sm:$0xff]  ;;  %v80_v62 = vld [vmem:[#allocation5 + $0x118] sm:$0xff]  ;;  %v410_v19 = vmov 1966171168  }
  0x30   :  { %152 = vmatprep.subr.mxu0 %v56_v20  ;;  %v79_v63 = vld [vmem:[#allocation5 + $0x110] sm:$0xff]  ;;  %v78_v0 = vld [vmem:[#allocation5 + $0x108] sm:$0xff]  ;;  %v77_v1 = vld [vmem:[#allocation5 + $0x100] sm:$0xff]  ;;  %v242_v20 = vunpack.c.l.s4 %v410_v19 }
  0x31   :  { %153 = vmatpush1.msra.mxu0 %v55_v21  ;;  %v109_v5 = vld [vmem:[%s472_s2] sm:$0x3]  ;;  %s411_s2 = smov [#allocation7]  }
  0x32   :  { %154 = vmatprep.subr.mxu0 %v54_v22  ;;  %v114_v7 = vrot.slane %v109_v5, %v113_v4  ;;  %v118_v8 = vrot.slane %v109_v5, %v117_v6  ;;  %s286_s27 = sshll.u32 %s411_s2, 4  ;;  %s287_s27 = int_to_ptr.vmem [resolvable:$true] %s286_s27 }
  0x33   :  { %155 = vmatpush1.msra.mxu0 %v53_v23  ;;  %s358_s28 = scalar_lea.vmem %s287_s27, 32  ;;  %p363_p11 = scmp.lt.s32.totalorder %s287_s27, %s287_s27 }
  0x34   :  { %156 = vmatprep.subr.mxu0 %v52_v25  ;;  %v243_v25 = vunpack.c.0.s8 %v242_v20  ;;  %p359_p10 = scmp.ne.s32.totalorder %s287_s27, %s358_s28  ;;  %p364_p12 = scmp.lt.s32.totalorder %s358_s28, %s358_s28 }
  0x35   :  { %157 = vmatpush1.msra.mxu0 %v51_v27 }
  0x36   :  { %158 = vmatprep.subr.mxu0 %v50_v28  ;;  %p365_p13 = por %p364_p12, %p363_p11 }
  0x37   :  { %159 = vmatpush1.msra.mxu0 %v49_v29 }
  0x38   :  { %160 = vmatprep.subr.mxu0 %v48_v30  ;;  %v246_v30 = vsub.s32 %v243_v25, %v112_v3  ;;  %p366_p0 = pnand %p365_p13, %p359_p10 }
  0x39   :  { %161 = vmatpush1.msra.mxu0 %v47_v31 }
  0x3a   :  { %162 = vmatprep.subr.mxu0 %v46_v32 }
  0x3b   :  { %163 = vmatpush1.msra.mxu0 %v45_v33 }
  0x3c   :  { %164 = vmatprep.subr.mxu0 %v108_v34 }
  0x3d   :  { %165 = vmatpush2.msra.mxu0 %v107_v35 }
  0x3e   :  { %166 = vmatprep.subr.mxu0 %v106_v36 }
  0x3f   :  { %167 = vmatpush2.msra.mxu0 %v105_v37 }
  0x40   :  { %168 = vmatprep.subr.mxu0 %v104_v38 }
  0x41   :  { %169 = vmatpush2.msra.mxu0 %v103_v39 }
  0x42   :  { %170 = vmatprep.subr.mxu0 %v102_v40 }
  0x43   :  { %171 = vmatpush2.msra.mxu0 %v101_v41 }
  0x44   :  { %172 = vmatprep.subr.mxu0 %v100_v42 }
  0x45   :  { %173 = vmatpush2.msra.mxu0 %v99_v43 }
  0x46   :  { %174 = vmatprep.subr.mxu0 %v98_v44 }
  0x47   :  { %175 = vmatpush2.msra.mxu0 %v97_v45 }
  0x48   :  { %176 = vmatprep.subr.mxu0 %v96_v46 }
  0x49   :  { %177 = vmatpush2.msra.mxu0 %v95_v47 }
  0x4a   :  { %178 = vmatprep.subr.mxu0 %v94_v48 }
  0x4b   :  { %179 = vmatpush2.msra.mxu0 %v93_v49 }
  0x4c   :  { %180 = vmatprep.subr.mxu0 %v92_v50 }
  0x4d   :  { %181 = vmatpush2.msra.mxu0 %v91_v51 }
  0x4e   :  { %182 = vmatprep.subr.mxu0 %v90_v52 }
  0x4f   :  { %183 = vmatpush2.msra.mxu0 %v89_v53 }
  0x50   :  { %184 = vmatprep.subr.mxu0 %v88_v54 }
  0x51   :  { %185 = vmatpush2.msra.mxu0 %v87_v55 }
  0x52   :  { %186 = vmatprep.subr.mxu0 %v86_v56 }
  0x53   :  { %187 = vmatpush2.msra.mxu0 %v85_v57 }
  0x54   :  { %188 = vmatprep.subr.mxu0 %v84_v58 }
  0x55   :  { %189 = vmatpush2.msra.mxu0 %v83_v59 }
  0x56   :  { %190 = vmatprep.subr.mxu0 %v82_v60 }
  0x57   :  { %191 = vmatpush2.msra.mxu0 %v81_v61 }
  0x58   :  { %192 = vmatprep.subr.mxu0 %v80_v62 }
  0x59   :  { %193 = vmatpush2.msra.mxu0 %v79_v63 }
  0x5a   :  { %194 = vmatprep.subr.mxu0 %v78_v0 }
  0x5b   :  { %195 = vmatpush2.msra.mxu0 %v77_v1 }
  0x5c   :  { %197 = vmatmul.mubr.f32.vlgmr.msra.gmra.mxu0 %v444_v24 }
 0x11c   :  { %v198_v9 = vpop.f32.mrf.mxu0 }
 0x11d   :  { %v199_v10 = vadd.f32 %v198_v9, %v114_v7 }
 0x11e   :  { %v200_v11 = vpop.f32.mrf.mxu0 }
 0x11f   :  { %v204_v12 = vsel %vm203_vm0, %v199_v10, 0.0  ;;  %v201_v13 = vadd.f32 %v200_v11, %v118_v8 }
 0x120   :  { %v205_v14 = vrot.slane %v204_v12, 4 }
 0x121   :  { %v211_v15 = vsel %vm203_vm0, %v201_v13, 0.0 }
 0x122   :  { %v206_v16 = vadd.f32 %v205_v14, %v204_v12  ;;  %v212_v17 = vrot.slane %v211_v15, 4 }
 0x124   :  { %v207_v18 = vrot.slane %v206_v16, 2  ;;  %v213_v21 = vadd.f32 %v212_v17, %v211_v15 }
 0x126   :  { %v208_v22 = vadd.f32 %v207_v18, %v206_v16  ;;  %v214_v23 = vrot.slane %v213_v21, 2 }
 0x128   :  { %v209_v24 = vrot.slane %v208_v22, 1  ;;  %v215_v26 = vadd.f32 %v214_v23, %v213_v21 }
 0x12a   :  { %v210_v27 = vadd.f32 %v209_v24, %v208_v22  ;;  %v216_v28 = vrot.slane %v215_v26, 1 }
 0x12c   :  { %v218_v29 = vmul.f32 0.5, %v210_v27  ;;  %v217_v31 = vadd.f32 %v216_v28, %v215_v26 }
 0x12e   :  { %v220_v32 = vsub.f32 %v199_v10, %v218_v29  ;;  %v219_v33 = vmul.f32 0.5, %v217_v31  ;;  %v240_v34 = vcombine.low %v210_v27, %v217_v31 }
 0x130   :  { %v222_v35 = vmul.f32 %v220_v32, %v220_v32  ;;  %v221_v36 = vsub.f32 %v201_v13, %v219_v33  ;;  %v247_v37 = vrot.slane %v240_v34, %v246_v30 }
 0x132   :  { %v224_v39 = vsel %vm203_vm0, %v222_v35, 0.0  ;;  %v223_v40 = vmul.f32 %v221_v36, %v221_v36  ;;  %v254_v41 = vrot.slane %v247_v37, %v246_v30 }
 0x133   :  { %v225_v42 = vrot.slane %v224_v39, 4 }
 0x134   :  { %v231_v43 = vsel %vm203_vm0, %v223_v40, 0.0  ;;  %260 = vst.msk [vmem:[#allocation7] sm:$0x3] %vm454_vm1, %v254_v41 }
 0x135   :  { %v226_v44 = vadd.f32 %v225_v42, %v224_v39  ;;  %v232_v45 = vrot.slane %v231_v43, 4 }
 0x136   :  { %369 = shalt.err (!%p366_p0)
}
 0x137   :  { %289 = dma.vmem_to_hbm [thread:$0]  %s287_s27, 32, %s473_s3, [#allocation4]   ;;  %v227_v46 = vrot.slane %v226_v44, 2  ;;  %v233_v47 = vadd.f32 %v232_v45, %v231_v43 }
 0x138   :  { %s412_s5 = smov [#allocation8]  }
 0x139   :  { %v228_v48 = vadd.f32 %v227_v46, %v226_v44  ;;  %v234_v49 = vrot.slane %v233_v47, 2  ;;  %s296_s6 = sshll.u32 %s412_s5, 4  ;;  %s297_s6 = int_to_ptr.vmem [resolvable:$true] %s296_s6 }
 0x13a   :  { %s378_s7 = scalar_lea.vmem %s297_s6, 32  ;;  %p383_p2 = scmp.lt.s32.totalorder %s297_s6, %s297_s6 }
 0x13b   :  { %v229_v50 = vrot.slane %v228_v48, 1  ;;  %v235_v51 = vadd.f32 %v234_v49, %v233_v47  ;;  %p379_p1 = scmp.ne.s32.totalorder %s297_s6, %s378_s7  ;;  %p384_p3 = scmp.lt.s32.totalorder %s378_s7, %s378_s7 }
 0x13d   :  { %v236_v52 = vrot.slane %v235_v51, 1  ;;  %v230_v53 = vadd.f32 %v229_v50, %v228_v48  ;;  %p385_p4 = por %p384_p3, %p383_p2 }
 0x13f   :  { %v237_v54 = vadd.f32 %v236_v52, %v235_v51  ;;  %p386_p5 = pnand %p385_p4, %p379_p1 }
 0x141   :  { %v263_v55 = vcombine.low %v230_v53, %v237_v54 }
 0x143   :  { %v270_v56 = vrot.slane %v263_v55, %v246_v30 }
 0x145   :  { %v277_v57 = vrot.slane %v270_v56, %v246_v30 }
 0x147   :  { %279 = vst.msk [vmem:[#allocation8] sm:$0x3] %vm454_vm1, %v277_v57 }
 0x148   :  { %389 = shalt.err (!%p386_p5)
}
 0x149   :  { %299 = dma.vmem_to_hbm [thread:$0]  %s297_s6, 32, %s474_s4, [#allocation9]  }
 0x14a   :  { %402 = dma.done.wait [#allocation4], 32  }
 0x14b   :  { %403 = vsyncadd [#allocation4], 4294967264 }
 0x14c   :  { %404 = dma.done.wait [#allocation9], 32  }
 0x14d   :  { %405 = vsyncadd [#allocation9], 4294967264 }
 0x14e   :  { %306 = vsyncpa [#allocation3], 1 }
 0x14f   :  { %307 = vsyncpa [#allocation6], 1 }
 0x150   :  { %308 = vsyncpa [#allocation4], 1 }
 0x151   :  { %309 = vsyncpa [#allocation9], 1 }

</bundles_post_ra>
